<compile_context>
chip_gen: v6e
topology: v6e:2x2x1
jax: 0.10.0
libtpu: 0.0.40
codegen_flags: <defaults>
</compile_context>

<pallas_src>
import functools

import jax
import jax.numpy as jnp
from jax import lax
from jax.experimental import pallas as pl
from jax.experimental.pallas import tpu as pltpu

LANE = 128  # TPU lane width


def _round_up(x: int, m: int) -> int:
    return ((x + m - 1) // m) * m


# --------------------------- dense (streaming) kernels ---------------------------

def _dense_single_kernel(tgt_ref, w_ref, pred_ref, loss_ref, *, epsilon: float, tv: int):
    """Single vocab tile: no accumulator scratch, no init/finalize phases."""
    pred = pred_ref[...]                                    # (TR, V) native dtype
    tgt = tgt_ref[...]                                      # (TR, 1) int32
    zero = jnp.array(0, dtype=pred.dtype)
    lane_ids = lax.broadcasted_iota(jnp.int32, (1, tv), 1)
    sel = jnp.where(lane_ids == tgt, pred, zero)            # select (never multiply) masks OOB lanes
    # At most one nonzero per row -> native-dtype row sum is exact; widen afterwards.
    g = jnp.sum(sel, axis=1, keepdims=True).astype(jnp.float32)   # (TR, 1)
    w = w_ref[...]                                          # (TR, 1) f32
    loss_ref[...] = jnp.where(w > 0.0, -jnp.log(g + epsilon) * w, 0.0)


def _dense_multi_kernel(tgt_ref, w_ref, pred_ref, loss_ref, acc_ref, *, epsilon: float, tv: int):
    """Vocab tiled: gathered probability accumulates in f32 scratch across vocab tiles."""
    v = pl.program_id(1)
    nv = pl.num_programs(1)

    @pl.when(v == 0)
    def _():
        acc_ref[...] = jnp.zeros_like(acc_ref)

    pred = pred_ref[...]                                    # (TR, TV) native dtype
    tgt = tgt_ref[...]                                      # (TR, 1) int32
    zero = jnp.array(0, dtype=pred.dtype)
    lane_ids = lax.broadcasted_iota(jnp.int32, (1, tv), 1) + v * tv
    sel = jnp.where(lane_ids == tgt, pred, zero)
    acc_ref[...] += jnp.sum(sel, axis=1, keepdims=True).astype(jnp.float32)

    @pl.when(v == nv - 1)
    def _():
        w = w_ref[...]
        loss_ref[...] = jnp.where(w > 0.0, -jnp.log(acc_ref[...] + epsilon) * w, 0.0)


# --------------------------- gather (manual-DMA) kernel ---------------------------

def _gather_kernel(start_ref, off_ref, w_ref, pred_hbm, loss_ref, buf, sem, *,
                   epsilon: float, tr: int, n_rows: int):
    """Per row, DMA only the 128-lane window of predictions containing that row's target."""
    r = pl.program_id(0)
    base = r * tr

    # Issue all TR row-window copies first so the DMA engine can pipeline them.
    @pl.loop(0, tr)
    def _issue(i):
        row = jnp.minimum(base + i, n_rows - 1)   # padded rows clamp to a valid row (weight 0)
        col = start_ref[row]                      # 128-aligned-ish start, clamped to [0, V-128]
        pltpu.make_async_copy(
            pred_hbm.at[pl.ds(row, 1), pl.ds(col, LANE)],
            buf.at[pl.ds(i, 1)],
            sem.at[0],
        ).start()

    # Drain: one wait per issued copy (each wait consumes exactly one row-copy's signal).
    @pl.loop(0, tr)
    def _drain(i):
        pltpu.make_async_copy(buf.at[pl.ds(i, 1)], buf.at[pl.ds(i, 1)], sem.at[0]).wait()

    pred = buf[...]                                         # (TR, 128) native dtype
    off = off_ref[...]                                      # (TR, 1) int32 (lane offset in window)
    zero = jnp.array(0, dtype=pred.dtype)
    lane_ids = lax.broadcasted_iota(jnp.int32, (1, LANE), 1)
    sel = jnp.where(lane_ids == off, pred, zero)
    g = jnp.sum(sel, axis=1, keepdims=True).astype(jnp.float32)
    w = w_ref[...]
    loss_ref[...] = jnp.where(w > 0.0, -jnp.log(g + epsilon) * w, 0.0)


# --------------------------------- wrapper ---------------------------------

def summarization_loss(predictions, targets, target_lengths,
                       epsilon: float = 1e-12, reduction: str = "mean",
                       use_gather: bool | None = None):
    """predictions: (S, B, V) probabilities; targets: (S, B) int (0 = padding);
    target_lengths: (B,).  Matches PyTorch SummarizationLoss.forward."""
    if reduction not in ("mean", "sum", "none"):
        raise ValueError(f"{reduction} is not a valid value for reduction")

    S, B, V = predictions.shape
    N = S * B
    itemsize = jnp.dtype(predictions.dtype).itemsize

    pred2d = predictions.reshape(N, V)                      # keep native dtype in HBM
    tgt = targets.astype(jnp.int32)
    mask = jnp.clip(tgt, 0, 1).astype(jnp.float32)          # (S, B)
    inv_len = 1.0 / target_lengths.astype(jnp.float32)      # (B,)
    w2d = (mask * inv_len[None, :]).reshape(N, 1)           # per-row weight
    tgt2d = tgt.reshape(N, 1)

    if use_gather is None:
        use_gather = V >= 16384                             # crossover where fetching only the
    use_gather = bool(use_gather) and V >= LANE              # target window clearly wins

    # ---- row-tile size ----
    if use_gather:
        tr = 256
    else:
        tv = V if V <= 4096 else 2048                        # single vocab tile when it fits
        budget = 4 * 1024 * 1024                             # ~4 MiB pred block (roofline plateau,
        tr = (budget // max(1, tv * itemsize)) // 8 * 8      #  v7x 64 MiB VMEM safe)
        tr = max(8, min(2048, tr))
    # v7x megacore: keep >= ~4 row tiles so both TensorCores get work.
    tr = min(tr, max(8, _round_up(pl.cdiv(N, 4), 8)))
    num_r = pl.cdiv(N, tr)
    n_pad_rows = num_r * tr

    # Pad targets/weights so their blocks are never partial; padded rows: target=-1
    # (never matches a lane) and weight=0 (never contributes, guarded by a select).
    pad = n_pad_rows - N
    if pad:
        tgt2d = jnp.pad(tgt2d, ((0, pad), (0, 0)), constant_values=-1)
        w2d = jnp.pad(w2d, ((0, pad), (0, 0)), constant_values=0.0)

    if use_gather:
        # Per-row 128-lane window start (clamped to [0, V-128]) + in-window lane offset.
        t_flat = tgt2d[:, 0]
        t_safe = jnp.clip(t_flat, 0, V - 1)
        col_start = jnp.clip((t_safe // LANE) * LANE, 0, V - LANE).astype(jnp.int32)  # SMEM scalars
        off2d = (t_flat - col_start).reshape(n_pad_rows, 1).astype(jnp.int32)

        cost = pl.CostEstimate(
            flops=int(3 * N * LANE),
            transcendentals=int(N),
            bytes_accessed=int(N * (LANE * itemsize + 12) + n_pad_rows * 4),
        )
        loss_rows = pl.pallas_call(
            functools.partial(_gather_kernel, epsilon=float(epsilon), tr=tr, n_rows=N),
            out_shape=jax.ShapeDtypeStruct((n_pad_rows, 1), jnp.float32),
            grid_spec=pltpu.PrefetchScalarGridSpec(
                num_scalar_prefetch=1,                               # col_start -> SMEM
                grid=(num_r,),
                in_specs=[
                    pl.BlockSpec((tr, 1), lambda r, starts: (r, 0)),  # lane offsets
                    pl.BlockSpec((tr, 1), lambda r, starts: (r, 0)),  # per-row weights
                    pl.BlockSpec(memory_space=pl.ANY),                # predictions stay in HBM
                ],
                out_specs=pl.BlockSpec((tr, 1), lambda r, starts: (r, 0)),
                scratch_shapes=[
                    pltpu.VMEM((tr, LANE), predictions.dtype),        # gathered row windows
                    pltpu.SemaphoreType.DMA((1,)),
                ],
            ),
            compiler_params=pltpu.CompilerParams(
                dimension_semantics=("parallel",),
            ),
            cost_estimate=cost,
        )(col_start, off2d, w2d, pred2d)
    else:
        num_v = pl.cdiv(V, tv)
        cost = pl.CostEstimate(
            flops=int(3 * N * V),
            transcendentals=int(N),
            bytes_accessed=int(N * V * itemsize + n_pad_rows * 12),
        )
        if num_v == 1:
            kernel = functools.partial(_dense_single_kernel, epsilon=float(epsilon), tv=tv)
            grid = (num_r,)
            in_specs = [
                pl.BlockSpec((tr, 1), lambda r: (r, 0)),
                pl.BlockSpec((tr, 1), lambda r: (r, 0)),
                pl.BlockSpec((tr, tv), lambda r: (r, 0)),
            ]
            out_specs = pl.BlockSpec((tr, 1), lambda r: (r, 0))
            scratch = []
            semantics = ("parallel",)
        else:
            kernel = functools.partial(_dense_multi_kernel, epsilon=float(epsilon), tv=tv)
            grid = (num_r, num_v)
            in_specs = [
                pl.BlockSpec((tr, 1), lambda r, v: (r, 0)),
                pl.BlockSpec((tr, 1), lambda r, v: (r, 0)),
                pl.BlockSpec((tr, tv), lambda r, v: (r, v)),
            ]
            out_specs = pl.BlockSpec((tr, 1), lambda r, v: (r, 0))
            scratch = [pltpu.VMEM((tr, 1), jnp.float32)]
            semantics = ("parallel", "arbitrary")

        loss_rows = pl.pallas_call(
            kernel,
            out_shape=jax.ShapeDtypeStruct((n_pad_rows, 1), jnp.float32),
            grid_spec=pltpu.PrefetchScalarGridSpec(
                num_scalar_prefetch=0,
                grid=grid,
                in_specs=in_specs,
                out_specs=out_specs,
                scratch_shapes=scratch,
            ),
            compiler_params=pltpu.CompilerParams(
                dimension_semantics=semantics,
                vmem_limit_bytes=40 * 1024 * 1024,
            ),
            cost_estimate=cost,
        )(tgt2d, w2d, pred2d)

    per_row = loss_rows[:N, 0]                              # (N,) = (S*B,) weighted NLL per token
    if reduction == "none":
        return per_row.reshape(S, B).sum(axis=0)            # per-batch loss (B,)
    total = jnp.sum(per_row)
    if reduction == "mean":
        return total / B
    return total                                            # "sum"


# --------------------------------- self-test ---------------------------------

if __name__ == "__main__":
    def make_case(key, S, B, V):
        k_pred, k_tgt, k_len = jax.random.split(key, 3)
        logits = jax.random.normal(k_pred, (S, B, V), dtype=jnp.float32)
        predictions = jax.nn.softmax(logits, axis=-1)
        targets = jax.random.randint(k_tgt, (S, B), minval=1, maxval=V, dtype=jnp.int32)
        lengths = jax.random.randint(k_len, (B,), minval=max(1, S // 2), maxval=S + 1)
        seq_ids = jnp.arange(S)[:, None]
        targets = jnp.where(seq_ids < lengths[None, :], targets, 0)   # 0 = padding index
        return predictions, targets, lengths.astype(jnp.float32)

    def ref_per_batch(predictions, targets, target_lengths, epsilon: float = 1e-12):
        mask = jnp.clip(targets, 0, 1).astype(jnp.float32)
        g = jnp.take_along_axis(predictions.astype(jnp.float32),
                                targets[:, :, None], axis=2)[..., 0]
        loss = -jnp.log(g + epsilon) * mask
        return jnp.sum(loss, axis=0) / target_lengths        # (B,)

    key = jax.random.PRNGKey(0)
    k1, k2, k3 = jax.random.split(key, 3)

    # 1) Small vocab -> dense single-vocab-tile path; checks mean / sum / none reductions.
    p1, t1, l1 = make_case(k1, S=8, B=4, V=128)
    ref1 = ref_per_batch(p1, t1, l1)
    out_mean = jax.block_until_ready(summarization_loss(p1, t1, l1, reduction="mean"))
    out_sum = jax.block_until_ready(summarization_loss(p1, t1, l1, reduction="sum"))
    out_none = jax.block_until_ready(summarization_loss(p1, t1, l1, reduction="none"))
    assert jnp.allclose(out_mean, jnp.mean(ref1), rtol=1e-5, atol=1e-5), (out_mean, jnp.mean(ref1))
    assert jnp.allclose(out_sum, jnp.sum(ref1), rtol=1e-5, atol=1e-5), (out_sum, jnp.sum(ref1))
    assert jnp.allclose(out_none, ref1, rtol=1e-5, atol=1e-5), (out_none, ref1)

    # 2) Vocab > one lane tile -> dense multi-vocab-tile path (ragged last vocab tile).
    p2, t2, l2 = make_case(k2, S=8, B=4, V=6400)
    out2 = jax.block_until_ready(summarization_loss(p2, t2, l2))
    ref2 = jnp.mean(ref_per_batch(p2, t2, l2))
    assert jnp.allclose(out2, ref2, rtol=1e-5, atol=1e-5), (out2, ref2)

    # 3) Manual-DMA gather path (forced here; auto-enabled for V >= 16384).  V is not a
    #    multiple of 128 to exercise the clamped 128-lane target window.
    p3, t3, l3 = make_case(k3, S=8, B=8, V=2000)
    out3 = jax.block_until_ready(summarization_loss(p3, t3, l3, use_gather=True))
    ref3 = jnp.mean(ref_per_batch(p3, t3, l3))
    assert jnp.allclose(out3, ref3, rtol=1e-5, atol=1e-5), (out3, ref3)

    print("KERNEL_OK")
</pallas_src>

<mosaic_0001>
module attributes {stable_mosaic.version = 11 : i64} {
  func.func @_dense_single_kernel(%arg0: i32, %arg1: memref<8x1xi32, #tpu.memory_space<vmem>>, %arg2: memref<8x1xf32, #tpu.memory_space<vmem>>, %arg3: memref<8x128xf32, #tpu.memory_space<vmem>>, %arg4: memref<8x1xf32, #tpu.memory_space<vmem>>) attributes {dimension_semantics = [#tpu.dimension_semantics<parallel>], iteration_bounds = array<i64: 4>, scalar_prefetch = 0 : i64, scratch_operands = 0 : i64, tpu.core_type = #tpu.core_type<tc>, window_params = [{transform_indices = @transform_0, window_bounds = array<i64: 8, 1>}, {transform_indices = @transform_1, window_bounds = array<i64: 8, 1>}, {transform_indices = @transform_2, window_bounds = array<i64: 8, 128>}, {transform_indices = @transform_3, window_bounds = array<i64: 8, 1>}]} {
    %c0 = arith.constant 0 : index
    %c0_0 = arith.constant 0 : index
    %0 = vector.load %arg3[%c0, %c0_0] : memref<8x128xf32, #tpu.memory_space<vmem>>, vector<8x128xf32>
    %c0_1 = arith.constant 0 : index
    %c0_2 = arith.constant 0 : index
    %1 = vector.load %arg1[%c0_1, %c0_2] : memref<8x1xi32, #tpu.memory_space<vmem>>, vector<8x1xi32>
    %2 = tpu.iota {dimensions = array<i32: 1>} : vector<1x128xi32>
    %3 = vector.broadcast %2 : vector<1x128xi32> to vector<8x128xi32>
    %4 = vector.broadcast %1 : vector<8x1xi32> to vector<8x128xi32>
    %5 = arith.cmpi eq, %3, %4 : vector<8x128xi32>
    %cst = arith.constant 0.000000e+00 : f32
    %6 = vector.broadcast %cst : f32 to vector<8x128xf32>
    %7 = arith.select %5, %0, %6 : vector<8x128xi1>, vector<8x128xf32>
    %cst_3 = arith.constant dense<0.000000e+00> : vector<8xf32>
    %8 = vector.multi_reduction <add>, %7, %cst_3 [1] : vector<8x128xf32> to vector<8xf32>
    %9 = vector.shape_cast %8 : vector<8xf32> to vector<8x1xf32>
    %c0_4 = arith.constant 0 : index
    %c0_5 = arith.constant 0 : index
    %10 = vector.load %arg2[%c0_4, %c0_5] : memref<8x1xf32, #tpu.memory_space<vmem>>, vector<8x1xf32>
    %cst_6 = arith.constant 0.000000e+00 : f32
    %11 = vector.broadcast %cst_6 : f32 to vector<8x1xf32>
    %12 = arith.cmpf ogt, %10, %11 : vector<8x1xf32>
    %cst_7 = arith.constant 9.99999996E-13 : f32
    %13 = vector.broadcast %cst_7 : f32 to vector<8x1xf32>
    %14 = arith.addf %9, %13 : vector<8x1xf32>
    %15 = math.log %14 : vector<8x1xf32>
    %cst_8 = arith.constant 0.000000e+00 : f32
    %16 = vector.broadcast %cst_8 : f32 to vector<8x1xf32>
    %17 = arith.subf %16, %15 : vector<8x1xf32>
    %18 = arith.mulf %17, %10 : vector<8x1xf32>
    %cst_9 = arith.constant 0.000000e+00 : f32
    %19 = vector.broadcast %cst_9 : f32 to vector<8x1xf32>
    %20 = arith.select %12, %18, %19 : vector<8x1xi1>, vector<8x1xf32>
    %c0_10 = arith.constant 0 : index
    %c0_11 = arith.constant 0 : index
    %21 = vector.load %arg4[%c0_10, %c0_11] : memref<8x1xf32, #tpu.memory_space<vmem>>, vector<8x1xf32>
    tpu.vector_store %arg4[%c0_10, %c0_11], %20 {strides = array<i32>} : memref<8x1xf32, #tpu.memory_space<vmem>>, vector<8x1xf32>,
    return
  }
  func.func @transform_0(%arg0: i32) -> (i32, i32) {
    %c0_i32 = arith.constant 0 : i32
    %c0_i32_0 = arith.constant 0 : i32
    return %arg0, %c0_i32 : i32, i32
  }
  func.func @transform_1(%arg0: i32) -> (i32, i32) {
    %c0_i32 = arith.constant 0 : i32
    %c0_i32_0 = arith.constant 0 : i32
    return %arg0, %c0_i32 : i32, i32
  }
  func.func @transform_2(%arg0: i32) -> (i32, i32) {
    %c0_i32 = arith.constant 0 : i32
    %c0_i32_0 = arith.constant 0 : i32
    return %arg0, %c0_i32 : i32, i32
  }
  func.func @transform_3(%arg0: i32) -> (i32, i32) {
    %c0_i32 = arith.constant 0 : i32
    %c0_i32_0 = arith.constant 0 : i32
    return %arg0, %c0_i32 : i32, i32
  }
}

</mosaic_0001>

<bundles_post_ra>
// kernel: tpu_custom_call.1
= control target key start
LH: loop header
LB: loop body
LE: loop exit
PB: predicated region body
PF: predicated region fallthrough
CT: control target
= control target key end

     0   :  { %s350_s12 = smov 0   ;;  %s373_s0 = inlined_call_operand.vmem [shape: s32[32,1], index: 0, kind: input, shape index: {}]   ;;  %s374_s1 = inlined_call_operand.vmem [shape: f32[32,1], index: 1, kind: input, shape index: {}]   ;;  %s375_s2 = inlined_call_operand.vmem [shape: f32[32,128], index: 2, kind: input, shape index: {}]   ;;  %s376_s3 = inlined_call_operand.vmem [shape: f32[32,1], index: 3, kind: output, shape index: {}]  }
   0x1 LB: > { %s298_s13 = sadd.s32 4294967295, %s327_s12   ;;  %p302_p0 = scmp.ge.s32.totalorder %s327_s12, 1  ;;  %s327_s12 = sphi %s350_s12, %s13_s12  }
   0x2   : > { %p154_p1 = scmp.lt.s32.totalorder %s327_s12, 5 }
   0x4   : > { %p155_p2 = pnand %p302_p0, %p154_p1 }
   0x5   : > { %p184_p3 = scmp.lt.s32.totalorder (!%p155_p2), %s298_s13, 3 }
   0x6   : > { %158 = sbr.rel (%p155_p2) target bundleno = 303 (0x12f), region = 32 }
   0xb   : > { %v329_v0 = vmov 0   ;;  %s378_s13 = smov (!%p184_p3, %s298_s13), 3  ;;  %v202_v2 = vlaneseq  ;;  %vm219_vm2 = vcmask 7168  }
   0xc   : > { %318 = vset.pattern.permute.xlu0 %v329_v0  ;;  %s303_s14 = sshll.u32 %s378_s13, 3 }
   0xd   : > { %s187_s17 = scalar_lea.vmem %s373_s0, %s303_s14  ;;  %s195_s20 = scalar_lea.vmem %s375_s2, %s303_s14  ;;  %v203_v3 = vand.u32 127, %v202_v2 }
   0xe   : > { %v201_v1 = vld [vmem:[%s187_s17] sm:$0xff]  ;;  %s191_s23 = scalar_lea.vmem %s374_s1, %s303_s14  ;;  %s199_s26 = scalar_lea.vmem %s376_s3, %s303_s14 }
   0xf   : > { %205 = vperm.xlu0 %318, %v201_v1   ;;  %v200_v4 = vld [vmem:[%s195_s20] sm:$0xff] }
  0x10   : > { %v211_v10 = vld [vmem:[%s191_s23] sm:$0xff] }
  0x11   : > { %vm212_vm1 = vcmp.gt.f32.partialorder %v211_v10, 0.0 }
  0x8a   : > { %v206_v5 = vpop.permute.xlu0 %205 }
  0x8b   : > { %vm207_vm0 = vcmp.eq.s32.totalorder %v203_v3, %v206_v5 }
  0x8c   : > { %v208_v6 = vsel %vm207_vm0, %v200_v4, 0.0 }
  0x8d   : > { %209 = vadd.xlane.f32.xlu0 %v208_v6 }
 0x116   : > { %v210_v7 = vpop.xlane.xlu0 %209 }
 0x117   : > { %v213_v8 = vadd.f32 1e-12, %v210_v7 }
 0x119   : > { %319 = vlog2.f32 %v213_v8 }
 0x126   : > { %v320_v9 = vpop.eup %319 }
 0x127   : > { %v215_v11 = vmul.f32 0.6931472, %v320_v9 }
 0x129   : > { %v216_v12 = vsub.f32 0.0, %v215_v11 }
 0x12b   : > { %v217_v13 = vmul.f32 %v216_v12, %v211_v10 }
 0x12d   : > { %v218_v14 = vsel %vm212_vm1, %v217_v13, 0.0 }
 0x12e   : > { %220 = vst.msk [vmem:[%s199_s26] sm:$0xff] %vm219_vm2, %v218_v14 }
 0x12f PF: > { %s13_s12 = sadd.s32 1, %s327_s12  }
 0x130   : > { %p10_p4 = scmp.ge.s32.totalorder %s13_s12, 6  }
 0x132   :  { %12 = sbr.rel (!%p10_p4) target bundleno = 1 (0x1), region = 68 }

</bundles_post_ra>
